<compile_context>
chip_gen: v5e
topology: v5e:2x2
jax: 0.10.0
libtpu: 0.0.40
codegen_flags: <defaults>
</compile_context>

<pallas_src>
import numpy as np
import jax
import jax.numpy as jnp
from jax.experimental import pallas as pl
from jax.experimental.pallas import tpu as pltpu


# ----------------------------------------------------------------------------
# Kernel: mean over axis 1 of a (B, T, F) array, tiled as (B, t_blk, f_blk).
# Grid = (num_feature_tiles, num_time_chunks); time (reduction) axis is last.
# ----------------------------------------------------------------------------
def _make_tap_kernel(inv_t):
    def kernel(x_ref, o_ref, acc_ref):
        ti = pl.program_id(1)

        @pl.when(ti == 0)
        def _init():
            acc_ref[...] = jnp.zeros_like(acc_ref)

        # Sublane (time) reduction of the current block, accumulated in f32.
        acc_ref[...] += jnp.sum(x_ref[...].astype(jnp.float32), axis=1)

        @pl.when(ti == pl.num_programs(1) - 1)
        def _finalize():
            o_ref[...] = (acc_ref[...] * inv_t).astype(o_ref.dtype)

    return kernel


def _pick_block(dim, align, max_blk):
    """Full dim if small or unaligned; otherwise the largest multiple-of-`align`
    divisor of `dim` that is <= max_blk."""
    if dim <= max_blk or dim % align != 0:
        return dim
    blk = max_blk - (max_blk % align)
    while dim % blk != 0:
        blk -= align
    return max(blk, align)


# ----------------------------------------------------------------------------
# Wrapper
# ----------------------------------------------------------------------------
def temporal_average_pooling(x):
    """Pallas forward of TemporalAveragePooling: mean over dim 1.

    Accepts any rank >= 2 input (B, T, ...); returns shape (B, ...)."""
    B, T = x.shape[0], x.shape[1]
    rest = x.shape[2:]
    F = int(np.prod(rest)) if rest else 1
    x3 = x.reshape(B, T, F)                     # batch-first, no transposes

    t_blk = _pick_block(T, 8, 128)              # sublane-aligned time chunks
    f_blk = _pick_block(F, 128, 512)            # lane-aligned feature tiles
    nt = T // t_blk
    nf = F // f_blk

    out = pl.pallas_call(
        _make_tap_kernel(1.0 / T),
        out_shape=jax.ShapeDtypeStruct((B, F), x.dtype),
        grid_spec=pltpu.PrefetchScalarGridSpec(
            num_scalar_prefetch=0,
            grid=(nf, nt),                                       # reduction axis last
            in_specs=[
                pl.BlockSpec((B, t_blk, f_blk), lambda fi, ti: (0, ti, fi)),
            ],
            out_specs=pl.BlockSpec((B, f_blk), lambda fi, ti: (0, fi)),
            scratch_shapes=[pltpu.VMEM((B, f_blk), jnp.float32)],
        ),
        compiler_params=pltpu.CompilerParams(
            dimension_semantics=("parallel", "arbitrary"),
        ),
    )(x3)

    return out.reshape((B,) + rest)


if __name__ == "__main__":
    key = jax.random.PRNGKey(0)
    k1, k2, k3 = jax.random.split(key, 3)

    # (a) typical encoder output: (batch, seq, hidden) = (2, 8, 32)
    x_a = jax.random.normal(k1, (2, 8, 32), dtype=jnp.float32)
    out_a = jax.block_until_ready(temporal_average_pooling(x_a))
    ref_a = jnp.mean(x_a, axis=1)
    np.testing.assert_allclose(np.asarray(out_a), np.asarray(ref_a),
                               rtol=1e-5, atol=1e-5)
    assert out_a.shape == (2, 32)

    # (b) raw 5-D skeleton-style input (n, t, m, v, c) — mean over t.
    x_b = jax.random.normal(k2, (2, 8, 4, 2, 2), dtype=jnp.float32)
    out_b = jax.block_until_ready(temporal_average_pooling(x_b))
    ref_b = jnp.mean(x_b, axis=1)
    np.testing.assert_allclose(np.asarray(out_b), np.asarray(ref_b),
                               rtol=1e-5, atol=1e-5)
    assert out_b.shape == (2, 4, 2, 2)

    # (c) larger lane-dense case exercising the tiled / accumulating grid path
    #     (feature tiles "parallel", temporal chunks "arbitrary").
    x_c = jax.random.normal(k3, (4, 256, 1024), dtype=jnp.float32)
    out_c = jax.block_until_ready(temporal_average_pooling(x_c))
    ref_c = jnp.mean(x_c, axis=1)
    np.testing.assert_allclose(np.asarray(out_c), np.asarray(ref_c),
                               rtol=1e-4, atol=1e-5)
    assert out_c.shape == (4, 1024)

    print("KERNEL_OK")
</pallas_src>

<mosaic_0001>
module attributes {stable_mosaic.version = 11 : i64} {
  func.func @kernel(%arg0: i32, %arg1: i32, %arg2: memref<2x8x32xf32, #tpu.memory_space<vmem>>, %arg3: memref<2x32xf32, #tpu.memory_space<vmem>>, %arg4: memref<2x32xf32, #tpu.memory_space<vmem>>) attributes {dimension_semantics = [#tpu.dimension_semantics<parallel>, #tpu.dimension_semantics<arbitrary>], iteration_bounds = array<i64: 1, 1>, scalar_prefetch = 0 : i64, scratch_operands = 1 : i64, tpu.core_type = #tpu.core_type<tc>, window_params = [{transform_indices = @transform_0, window_bounds = array<i64: 2, 8, 32>}, {transform_indices = @transform_1, window_bounds = array<i64: 2, 32>}]} {
    %c0_i32 = arith.constant 0 : i32
    %0 = arith.cmpi eq, %arg1, %c0_i32 : i32
    %1 = arith.extui %0 : i1 to i32
    %c0_i32_0 = arith.constant 0 : i32
    %2 = arith.cmpi ne, %1, %c0_i32_0 : i32
    scf.if %2 {
      %cst_9 = arith.constant 0.000000e+00 : f32
      %11 = vector.broadcast %cst_9 : f32 to vector<2x32xf32>
      %c0_10 = arith.constant 0 : index
      %c0_11 = arith.constant 0 : index
      %12 = vector.load %arg4[%c0_10, %c0_11] : memref<2x32xf32, #tpu.memory_space<vmem>>, vector<2x32xf32>
      tpu.vector_store %arg4[%c0_10, %c0_11], %11 {strides = array<i32>} : memref<2x32xf32, #tpu.memory_space<vmem>>, vector<2x32xf32>,
    } else {
    }
    %c0 = arith.constant 0 : index
    %c0_1 = arith.constant 0 : index
    %3 = vector.load %arg4[%c0, %c0_1] : memref<2x32xf32, #tpu.memory_space<vmem>>, vector<2x32xf32>
    %c0_2 = arith.constant 0 : index
    %c0_3 = arith.constant 0 : index
    %c0_4 = arith.constant 0 : index
    %4 = vector.load %arg2[%c0_2, %c0_3, %c0_4] : memref<2x8x32xf32, #tpu.memory_space<vmem>>, vector<2x8x32xf32>
    %cst = arith.constant dense<0.000000e+00> : vector<2x32xf32>
    %5 = vector.multi_reduction <add>, %4, %cst [1] : vector<2x8x32xf32> to vector<2x32xf32>
    %6 = arith.addf %3, %5 : vector<2x32xf32>
    %c0_5 = arith.constant 0 : index
    %c0_6 = arith.constant 0 : index
    %7 = vector.load %arg4[%c0_5, %c0_6] : memref<2x32xf32, #tpu.memory_space<vmem>>, vector<2x32xf32>
    tpu.vector_store %arg4[%c0_5, %c0_6], %6 {strides = array<i32>} : memref<2x32xf32, #tpu.memory_space<vmem>>, vector<2x32xf32>,
    %c0_i32_7 = arith.constant 0 : i32
    %8 = arith.cmpi eq, %arg1, %c0_i32_7 : i32
    %9 = arith.extui %8 : i1 to i32
    %c0_i32_8 = arith.constant 0 : i32
    %10 = arith.cmpi ne, %9, %c0_i32_8 : i32
    scf.if %10 {
      %c0_9 = arith.constant 0 : index
      %c0_10 = arith.constant 0 : index
      %11 = vector.load %arg4[%c0_9, %c0_10] : memref<2x32xf32, #tpu.memory_space<vmem>>, vector<2x32xf32>
      %cst_11 = arith.constant 1.250000e-01 : f32
      %12 = vector.broadcast %cst_11 : f32 to vector<2x32xf32>
      %13 = arith.mulf %11, %12 : vector<2x32xf32>
      %c0_12 = arith.constant 0 : index
      %c0_13 = arith.constant 0 : index
      %14 = vector.load %arg3[%c0_12, %c0_13] : memref<2x32xf32, #tpu.memory_space<vmem>>, vector<2x32xf32>
      tpu.vector_store %arg3[%c0_12, %c0_13], %13 {strides = array<i32>} : memref<2x32xf32, #tpu.memory_space<vmem>>, vector<2x32xf32>,
    } else {
    }
    return
  }
  func.func @transform_0(%arg0: i32, %arg1: i32) -> (i32, i32, i32) {
    %c0_i32 = arith.constant 0 : i32
    %c0_i32_0 = arith.constant 0 : i32
    return %c0_i32, %arg1, %arg0 : i32, i32, i32
  }
  func.func @transform_1(%arg0: i32, %arg1: i32) -> (i32, i32) {
    %c0_i32 = arith.constant 0 : i32
    %c0_i32_0 = arith.constant 0 : i32
    return %c0_i32, %arg0 : i32, i32
  }
}

</mosaic_0001>

<bundles_post_ra>
// kernel: tpu_custom_call.1
= control target key start
LH: loop header
LB: loop body
LE: loop exit
PB: predicated region body
PF: predicated region fallthrough
CT: control target
= control target key end

     0   :  { %6 = vsyncpa [#allocation4], 0  ;;  %s161_s0 = inlined_call_operand.hbm [shape: f32[2,8,32], index: 0, kind: input, shape index: {}]   ;;  %s162_s1 = inlined_call_operand.hbm [shape: f32[2,32], index: 1, kind: output, shape index: {}]  }
   0x1   :  { %7 = vsyncpa [#allocation5], 0  ;;  %s12_s8 = sshll.u32 %s161_s0, 4  ;;  %s137_s9 = smov [#allocation3]   ;;  %s13_s8 = int_to_ptr.hbm [resolvable:$true] %s12_s8 }
   0x2   :  { %s14_s10 = sshll.u32 %s137_s9, 4  ;;  %s138_s11 = smov 128   ;;  %s15_s10 = int_to_ptr.vmem [resolvable:$true] %s14_s10 }
   0x3   :  { %s139_s12 = smov 8  }
   0x4   :  { %20 = dma.hbm_to_vmem [thread:$0]  %s13_s8, 256, %s15_s10, [#allocation4], %s138_s11, %s138_s11, %s139_s12  }
   0x5   :  { %133 = dma.done.wait [#allocation4], 256  }
   0x6   :  { %134 = vsyncadd [#allocation4], 4294967040  ;;  %vm29_vm0 = vcmask 254976   ;;  %v140_v0 = vmov 0.0   ;;  %vm34_vm1 = vcmask 261120   ;;  %v32_v1 = vld [vmem:[#allocation3] sm:$0xff] }
   0x7   :  { %30 = vst.msk [vmem:[#allocation2] sm:$0x3] %vm29_vm0, %v140_v0  ;;  %v33_v2 = vld [vmem:[#allocation3 + $0x8] sm:$0xff]  ;;  %v35_v3 = vsel %vm34_vm1, %v32_v1, 0.0  ;;  %vm51_vm2 = vcmask 1041409   ;;  %s141_s0 = smov [#allocation6]  }
   0x8   :  { %v42_v4 = vsel %vm34_vm1, %v33_v2, 0.0  ;;  %v36_v5 = vrot.slane %v35_v3, 4  ;;  %s68_s13 = sshll.u32 %s141_s0, 4  ;;  %s70_s16 = sshll.u32 %s162_s1, 4  ;;  %s69_s13 = int_to_ptr.vmem [resolvable:$true] %s68_s13  ;;  %s71_s16 = int_to_ptr.hbm [resolvable:$true] %s70_s16 }
   0x9   :  { %v43_v6 = vrot.slane %v42_v4, 4 }
   0xa   :  { %v37_v7 = vadd.f32 %v36_v5, %v35_v3 }
   0xb   :  { %v44_v8 = vadd.f32 %v43_v6, %v42_v4 }
   0xc   :  { %v38_v9 = vrot.slane %v37_v7, 2 }
   0xd   :  { %v45_v10 = vrot.slane %v44_v8, 2 }
   0xe   :  { %v39_v11 = vadd.f32 %v38_v9, %v37_v7  ;;  %v31_v15 = vld [vmem:[#allocation2] sm:$0x3] }
   0xf   :  { %v46_v12 = vadd.f32 %v45_v10, %v44_v8 }
  0x10   :  { %v40_v13 = vrot.slane %v39_v11, 1 }
  0x11   :  { %v47_v14 = vrot.slane %v46_v12, 1 }
  0x12   :  { %v41_v16 = vadd.f32 %v40_v13, %v39_v11 }
  0x13   :  { %v48_v17 = vadd.f32 %v47_v14, %v46_v12 }
  0x15   :  { %v52_v18 = vsel %vm51_vm2, %v48_v17, %v41_v16 }
  0x16   :  { %v54_v19 = vadd.f32 %v52_v18, %v31_v15 }
  0x18   :  { %56 = vst.msk [vmem:[#allocation2] sm:$0x3] %vm29_vm0, %v54_v19 }
  0x1f   :  { %v60_v20 = vld [vmem:[#allocation2] sm:$0x3] }
  0x20   :  { %v61_v21 = vmul.f32 0.125, %v60_v20 }
  0x22   :  { %62 = vst.msk [vmem:[#allocation6] sm:$0x3] %vm29_vm0, %v61_v21 }
  0x23   :  { %73 = dma.vmem_to_hbm [thread:$0]  %s69_s13, 32, %s71_s16, [#allocation5]  }
  0x24   :  { %135 = dma.done.wait [#allocation5], 32  }
  0x25   :  { %136 = vsyncadd [#allocation5], 4294967264 }
  0x26   :  { %78 = vsyncpa [#allocation4], 1 }
  0x27   :  { %79 = vsyncpa [#allocation5], 1 }

</bundles_post_ra>
